<compile_context>
chip_gen: v5e
topology: v5e:2x2
jax: 0.10.0
libtpu: 0.0.40
codegen_flags: <defaults>
</compile_context>

<pallas_src>
import jax
import jax.numpy as jnp
from jax import lax
from jax.experimental import pallas as pl
from jax.experimental.pallas import tpu as pltpu


_VMEM_LIMIT_BYTES = 48 << 20      # explicit scoped-VMEM budget (safe on v5e/v6e/v7x)
_VMEM_DATA_FRACTION = 0.75        # headroom for compiler scratch
_XLA_FALLBACK_ELEMS = 64 * 1024   # below this, kernel launch overhead dominates


def _round_up(x, m):
    return ((x + m - 1) // m) * m


def _node_classifier_kernel(x_ref, w_ref, b_ref, o_ref):
    # x_ref: (TN, D) compute_dtype, w_ref: (L, D) compute_dtype,
    # b_ref: (1, L) f32, o_ref: (TN, L) f32
    # TODO(synk): training-mode Dropout(p=0.1) would need pltpu.prng_seed /
    #             prng_random_bits masking + 1/(1-p) scaling; eval-mode here.
    logits = lax.dot_general(
        x_ref[...],
        w_ref[...],
        dimension_numbers=(((1,), (1,)), ((), ())),  # x @ W.T without a transpose op
        preferred_element_type=jnp.float32,
    )
    o_ref[...] = (logits + b_ref[...]).astype(o_ref.dtype)


def node_classifier_forward(inputs, weight, bias, *, max_row_tile=1024,
                            compute_dtype=jnp.bfloat16, force_pallas=False):
    """inputs: (N, D); weight: (L, D) (PyTorch nn.Linear layout); bias: (L,).

    Returns f32 logits of shape (N, L).
    """
    n, d = inputs.shape
    l, d_w = weight.shape
    assert d == d_w, f"input_dim mismatch: {d} vs {d_w}"

    # Tiny problems: XLA fusion beats the ~0.35 us/step kernel + DMA setup cost.
    if not force_pallas and n * d < _XLA_FALLBACK_ELEMS:
        return (inputs.astype(jnp.float32) @ weight.astype(jnp.float32).T
                + bias.astype(jnp.float32))

    in_itemsize = jnp.dtype(compute_dtype).itemsize
    pack = 8 * (4 // in_itemsize)           # sublane packing: 8 (f32), 16 (bf16)
    d_lanes = _round_up(d, 128)
    l_lanes = _round_up(l, 128)

    # VMEM accounting (tile-padded, double-buffered by BlockSpec pipelining):
    fixed = (2 * _round_up(l, pack) * d_lanes * in_itemsize   # weight (resident)
             + 2 * 8 * l_lanes * 4)                           # bias (resident, f32)
    per_row = 2 * d_lanes * in_itemsize + 2 * l_lanes * 4     # x tile + out tile
    budget = int(_VMEM_DATA_FRACTION * _VMEM_LIMIT_BYTES)

    if budget - fixed < pack * per_row:
        # TODO(synk): very large D*L head -> add a K (D) grid axis with an f32
        #             accumulator scratch instead of a full-D resident weight.
        return (inputs.astype(jnp.float32) @ weight.astype(jnp.float32).T
                + bias.astype(jnp.float32))

    tn_cap = min(max_row_tile, (budget - fixed) // per_row)
    if n <= tn_cap:
        tn = n                          # single block == full array: always legal
    else:
        tn = (tn_cap // pack) * pack    # multiple of the sublane packing

    grid = (pl.cdiv(n, tn),)

    x_c = inputs.astype(compute_dtype)
    w_c = weight.astype(compute_dtype)
    b2 = bias.astype(jnp.float32).reshape(1, l)

    cost = pl.CostEstimate(
        flops=2 * n * d * l,
        transcendentals=0,
        bytes_accessed=(n * d + l * d) * in_itemsize + (l + n * l) * 4,
    )

    return pl.pallas_call(
        _node_classifier_kernel,
        out_shape=jax.ShapeDtypeStruct((n, l), jnp.float32),
        grid=grid,
        in_specs=[
            pl.BlockSpec((tn, d), lambda i: (i, 0)),   # row tile of activations
            pl.BlockSpec((l, d), lambda i: (0, 0)),    # weight, VMEM-resident
            pl.BlockSpec((1, l), lambda i: (0, 0)),    # bias, VMEM-resident
        ],
        out_specs=pl.BlockSpec((tn, l), lambda i: (i, 0)),
        compiler_params=pltpu.CompilerParams(
            dimension_semantics=("parallel",),
            vmem_limit_bytes=_VMEM_LIMIT_BYTES,
        ),
        cost_estimate=cost,
    )(x_c, w_c, b2)


if __name__ == "__main__":
    key = jax.random.PRNGKey(0)
    k_x, k_w, k_b, k_x2 = jax.random.split(key, 4)

    # Module-consistent small shapes: N=8 nodes, input_dim=32, num_labels=8.
    N, INPUT_DIM, NUM_LABELS = 8, 32, 8
    bound = 1.0 / jnp.sqrt(jnp.float32(INPUT_DIM))
    x = jax.random.normal(k_x, (N, INPUT_DIM), dtype=jnp.float32)
    weight = jax.random.uniform(k_w, (NUM_LABELS, INPUT_DIM), dtype=jnp.float32,
                                minval=-bound, maxval=bound)
    bias = jax.random.uniform(k_b, (NUM_LABELS,), dtype=jnp.float32,
                              minval=-bound, maxval=bound)

    def ref_logits(xa, wa, ba):
        # Reference with the same bf16 operand cast / f32 accumulation.
        return jnp.dot(xa.astype(jnp.bfloat16), wa.astype(jnp.bfloat16).T,
                       preferred_element_type=jnp.float32) + ba

    # 1) Small-shape run forced through the Pallas kernel (single full-array block).
    logits = node_classifier_forward(x, weight, bias, force_pallas=True)
    jax.block_until_ready(logits)
    assert logits.shape == (N, NUM_LABELS)
    assert jnp.allclose(logits, ref_logits(x, weight, bias), atol=1e-3, rtol=1e-3)

    # 2) Multi-tile + ragged-last-tile run through the default (Pallas) dispatch.
    N2, D2 = 1040, 128
    bound2 = 1.0 / jnp.sqrt(jnp.float32(D2))
    x2 = jax.random.normal(k_x2, (N2, D2), dtype=jnp.float32)
    w2 = jax.random.uniform(k_w, (NUM_LABELS, D2), dtype=jnp.float32,
                            minval=-bound2, maxval=bound2)
    b2 = jax.random.uniform(k_b, (NUM_LABELS,), dtype=jnp.float32,
                            minval=-bound2, maxval=bound2)
    logits2 = node_classifier_forward(x2, w2, b2)
    jax.block_until_ready(logits2)
    assert logits2.shape == (N2, NUM_LABELS)
    assert jnp.allclose(logits2, ref_logits(x2, w2, b2), atol=2e-3, rtol=2e-3)

    # 3) Small-problem dispatch path (plain XLA fallback) stays exact in f32.
    logits3 = node_classifier_forward(x, weight, bias)
    jax.block_until_ready(logits3)
    assert jnp.allclose(logits3, x @ weight.T + bias, atol=1e-5, rtol=1e-5)

    print("KERNEL_OK")
</pallas_src>

<mosaic_0001>
module attributes {stable_mosaic.version = 11 : i64} {
  func.func @_node_classifier_kernel(%arg0: i32, %arg1: memref<8x32xbf16, #tpu.memory_space<vmem>>, %arg2: memref<8x32xbf16, #tpu.memory_space<vmem>>, %arg3: memref<1x8xf32, #tpu.memory_space<vmem>>, %arg4: memref<8x8xf32, #tpu.memory_space<vmem>>) attributes {dimension_semantics = [#tpu.dimension_semantics<parallel>], iteration_bounds = array<i64: 1>, scalar_prefetch = 0 : i64, scratch_operands = 0 : i64, tpu.core_type = #tpu.core_type<tc>, window_params = [{transform_indices = @transform_0, window_bounds = array<i64: 8, 32>}, {pipeline_mode = #tpu.pipeline_mode<synchronous>, transform_indices = @transform_1, window_bounds = array<i64: 8, 32>}, {pipeline_mode = #tpu.pipeline_mode<synchronous>, transform_indices = @transform_2, window_bounds = array<i64: 1, 8>}, {transform_indices = @transform_3, window_bounds = array<i64: 8, 8>}]} {
    %c0 = arith.constant 0 : index
    %c0_0 = arith.constant 0 : index
    %0 = vector.load %arg1[%c0, %c0_0] : memref<8x32xbf16, #tpu.memory_space<vmem>>, vector<8x32xbf16>
    %c0_1 = arith.constant 0 : index
    %c0_2 = arith.constant 0 : index
    %1 = vector.load %arg2[%c0_1, %c0_2] : memref<8x32xbf16, #tpu.memory_space<vmem>>, vector<8x32xbf16>
    %cst = arith.constant dense<0.000000e+00> : vector<8x8xf32>
    %2 = tpu.matmul %0, %1, %cst {dimension_numbers = #tpu.dot_dimension_numbers<[1], [1], [0], [0], [0, 0, 1, 0], [], []>} : vector<8x32xbf16>, vector<8x32xbf16>, vector<8x8xf32> -> vector<8x8xf32>
    %c0_3 = arith.constant 0 : index
    %c0_4 = arith.constant 0 : index
    %3 = vector.load %arg3[%c0_3, %c0_4] : memref<1x8xf32, #tpu.memory_space<vmem>>, vector<1x8xf32>
    %4 = vector.broadcast %3 : vector<1x8xf32> to vector<8x8xf32>
    %5 = arith.addf %2, %4 : vector<8x8xf32>
    %c0_5 = arith.constant 0 : index
    %c0_6 = arith.constant 0 : index
    %6 = vector.load %arg4[%c0_5, %c0_6] : memref<8x8xf32, #tpu.memory_space<vmem>>, vector<8x8xf32>
    tpu.vector_store %arg4[%c0_5, %c0_6], %5 {strides = array<i32>} : memref<8x8xf32, #tpu.memory_space<vmem>>, vector<8x8xf32>,
    return
  }
  func.func @transform_0(%arg0: i32) -> (i32, i32) {
    %c0_i32 = arith.constant 0 : i32
    %c0_i32_0 = arith.constant 0 : i32
    return %arg0, %c0_i32 : i32, i32
  }
  func.func @transform_1(%arg0: i32) -> (i32, i32) {
    %c0_i32 = arith.constant 0 : i32
    %c0_i32_0 = arith.constant 0 : i32
    %c0_i32_1 = arith.constant 0 : i32
    return %c0_i32, %c0_i32_0 : i32, i32
  }
  func.func @transform_2(%arg0: i32) -> (i32, i32) {
    %c0_i32 = arith.constant 0 : i32
    %c0_i32_0 = arith.constant 0 : i32
    %c0_i32_1 = arith.constant 0 : i32
    return %c0_i32, %c0_i32_0 : i32, i32
  }
  func.func @transform_3(%arg0: i32) -> (i32, i32) {
    %c0_i32 = arith.constant 0 : i32
    %c0_i32_0 = arith.constant 0 : i32
    return %arg0, %c0_i32 : i32, i32
  }
}

</mosaic_0001>

<bundles_post_ra>
// kernel: tpu_custom_call.1
= control target key start
LH: loop header
LB: loop body
LE: loop exit
PB: predicated region body
PF: predicated region fallthrough
CT: control target
= control target key end

     0   :  { %8 = vsyncpa [#allocation3], 0  ;;  %s208_s0 = inlined_call_operand.hbm [shape: bf16[8,32], index: 0, kind: input, shape index: {}]   ;;  %s209_s1 = inlined_call_operand.hbm [shape: bf16[8,32], index: 1, kind: input, shape index: {}]   ;;  %s210_s2 = inlined_call_operand.vmem [shape: f32[1,8], index: 2, kind: input, shape index: {}]   ;;  %s211_s3 = inlined_call_operand.hbm [shape: f32[8,8], index: 3, kind: output, shape index: {}]  }
   0x1   :  { %9 = vsyncpa [#allocation6], 0 }
   0x2   :  { %10 = vsyncpa [#allocation4], 0  ;;  %s16_s14 = sshll.u32 %s208_s0, 4  ;;  %s173_s15 = smov [#allocation2]   ;;  %s17_s14 = int_to_ptr.hbm [resolvable:$true] %s16_s14 }
   0x3   :  { %s18_s16 = sshll.u32 %s173_s15, 4  ;;  %s27_s19 = sshll.u32 %s209_s1, 4  ;;  %s19_s16 = int_to_ptr.vmem [resolvable:$true] %s18_s16  ;;  %s28_s19 = int_to_ptr.hbm [resolvable:$true] %s27_s19 }
   0x4   :  { %21 = dma.hbm_to_vmem [thread:$0]  %s17_s14, 64, %s19_s16, [#allocation3]  }
   0x5   :  { %s174_s20 = smov [#allocation5]  }
   0x6   :  { %s29_s21 = sshll.u32 %s174_s20, 4  ;;  %s30_s21 = int_to_ptr.vmem [resolvable:$true] %s29_s21 }
   0x7   :  { %32 = dma.hbm_to_vmem [thread:$0]  %s28_s19, 64, %s30_s21, [#allocation6]  }
   0x8   :  { %167 = dma.done.wait [#allocation3], 64  }
   0x9   :  { %168 = vsyncadd [#allocation3], 4294967232 }
   0xa   :  { %169 = dma.done.wait [#allocation6], 64  }
   0xb   :  { %170 = vsyncadd [#allocation6], 4294967232  ;;  %vm50_vm0 = vcmask 261120   ;;  %v45_v0 = vld [vmem:[#allocation5] sm:$0xf]  ;;  %s175_s1 = smov [#allocation7]  }
   0xc   :  { %v55_v1 = vsel %vm50_vm0, %v45_v0, 0  ;;  %v44_v2 = vld [vmem:[#allocation2] sm:$0xf]  ;;  %s77_s23 = sshll.u32 %s175_s1, 4  ;;  %s79_s26 = sshll.u32 %s211_s3, 4  ;;  %vm70_vm1 = vcmask 64512   ;;  %s78_s23 = int_to_ptr.vmem [resolvable:$true] %s77_s23  ;;  %s80_s26 = int_to_ptr.hbm [resolvable:$true] %s79_s26 }
   0xd   :  { %64 = vmatpush.bf16.xpose.msra.mxu0 %v55_v1  ;;  %v94_v3 = vld [vmem:[%s210_s2] ss:$0 sm:$0xff] }
  0x14   :  { %90 = vmatmul.msk.bf16.vlgmr.msra.gmra.mxu0 %vm50_vm0, %v44_v2 }
  0x91   :  { %v66_v4 = vpop.f32.mrf.mxu0 }
  0x92   :  { %v67_v5 = vadd.f32 %v94_v3, %v66_v4 }
  0x94   :  { %71 = vst.msk [vmem:[#allocation7] sm:$0xff] %vm70_vm1, %v67_v5 }
  0x95   :  { %82 = dma.vmem_to_hbm [thread:$0]  %s78_s23, 128, %s80_s26, [#allocation4]  }
  0x99   :  { %v68_v6 = vpop.f32.mrf.mxu0 }
  0x9a   :  { %171 = dma.done.wait [#allocation4], 128  }
  0x9b   :  { %172 = vsyncadd [#allocation4], 4294967168 }
  0x9c   :  { %87 = vsyncpa [#allocation3], 1 }
  0x9d   :  { %88 = vsyncpa [#allocation6], 1 }
  0x9e   :  { %89 = vsyncpa [#allocation4], 1 }

</bundles_post_ra>
